<compile_context>
chip_gen: v7x
topology: tpu7x:2x2x1
jax: 0.10.0
libtpu: 0.0.40
codegen_flags: <defaults>
</compile_context>

<pallas_src>
import jax
import jax.numpy as jnp
from jax.experimental import pallas as pl
from jax.experimental.pallas import tpu as pltpu

_LANE = 128


def _relu_times2_kernel(x_ref, o_ref):
    o_ref[...] = jnp.maximum(x_ref[...], 0) * 2


def _sublane_for_dtype(dtype) -> int:
    """Native sublane packing for the dtype (f32:8, bf16/f16:16, int8/fp8:32)."""
    itemsize = jnp.dtype(dtype).itemsize
    if itemsize >= 4:
        return 8
    if itemsize == 2:
        return 16
    return 32


def _chip_config():
    """Return (tensorcores_per_chip, max_block_bytes), conservatively by default."""
    try:
        kind = jax.devices()[0].device_kind.lower()
    except Exception:
        kind = ""
    if "v7" in kind:
        # Dual-TC, 3.2 TB/s HBM: 4 MiB blocks amortize the ~0.35 us/step cost.
        # 2 arrays x 2 buffers x 4 MiB = 16 MiB < 32 MiB scoped-VMEM default.
        return 2, 4 * 1024 * 1024
    if "v6" in kind:
        # Single TC, 32 MiB scoped-VMEM default: 4 MiB blocks fit comfortably.
        return 1, 4 * 1024 * 1024
    # v5e / unknown: 2 MiB blocks (8 MiB total) stay well under the 16 MiB
    # scoped-VMEM default, so no vmem_limit_bytes override is required.
    return 1, 2 * 1024 * 1024


def _pick_row_tile(rows: int, sublane: int, itemsize: int,
                   max_block_bytes: int, num_cores: int) -> int:
    """Row tile for a (rows, 128) slab: byte-sized, sublane-aligned blocks."""
    max_row_tile = (max_block_bytes // (_LANE * itemsize)) // sublane * sublane
    max_row_tile = max(sublane, max_row_tile)

    if rows <= sublane:
        # Tiny slab: one full-extent block (full-dim block is always legal).
        return rows

    if num_cores == 1:
        # Single TensorCore: extra grid steps buy nothing; use one block if it
        # fits, otherwise the largest aligned block.
        if rows <= max_row_tile:
            return rows
        return max_row_tile

    # Dual-TC (v7x): aim for an even number of grid steps so both cores get
    # balanced work under dimension_semantics=("parallel",).
    nsteps = -(-rows // max_row_tile)
    if nsteps < 2:
        nsteps = 2
    elif nsteps % 2:
        nsteps += 1
    row_tile = -(-rows // nsteps)
    row_tile = ((row_tile + sublane - 1) // sublane) * sublane
    return max(sublane, min(row_tile, max_row_tile))


def _run_slab(slab: jax.Array) -> jax.Array:
    rows, lane = slab.shape
    num_cores, max_block_bytes = _chip_config()
    sublane = _sublane_for_dtype(slab.dtype)
    itemsize = jnp.dtype(slab.dtype).itemsize
    row_tile = _pick_row_tile(rows, sublane, itemsize, max_block_bytes, num_cores)
    grid = (pl.cdiv(rows, row_tile),)
    return pl.pallas_call(
        _relu_times2_kernel,
        out_shape=jax.ShapeDtypeStruct((rows, lane), slab.dtype),
        grid_spec=pltpu.PrefetchScalarGridSpec(
            num_scalar_prefetch=0,
            grid=grid,
            in_specs=[pl.BlockSpec((row_tile, lane), lambda i: (i, 0))],
            out_specs=pl.BlockSpec((row_tile, lane), lambda i: (i, 0)),
        ),
        compiler_params=pltpu.CompilerParams(
            dimension_semantics=("parallel",)
        ),
    )(slab)


def submodule_forward(x: jax.Array) -> jax.Array:
    """relu(x) * 2, elementwise, same shape/dtype as input."""
    orig_shape = x.shape
    total = x.size

    if total % _LANE == 0:
        # Fast path: any lane-divisible size is a pure reshape to a lane-dense
        # (rows, 128) slab; a ragged final row-block is masked by Pallas.
        out = _run_slab(x.reshape(total // _LANE, _LANE))
        return out.reshape(orig_shape)

    # Ragged fallback (tiny / odd sizes only, e.g. the 3-element test vector):
    # pad the flat tail to a lane multiple once and slice it off afterwards.
    pad_to = ((total + _LANE - 1) // _LANE) * _LANE
    flat = jnp.pad(x.reshape(-1), (0, pad_to - total))
    out = _run_slab(flat.reshape(pad_to // _LANE, _LANE))
    return out.reshape(-1)[:total].reshape(orig_shape)


if __name__ == "__main__":
    key = jax.random.PRNGKey(0)
    # Small NCHW input consistent with a typical conv-net feature map.
    x = jax.random.normal(key, (2, 4, 16, 16), dtype=jnp.float32)

    out = submodule_forward(x)
    jax.block_until_ready(out)

    ref = jnp.maximum(x, 0.0) * 2
    assert out.shape == x.shape and out.dtype == x.dtype
    assert jnp.allclose(out, ref, atol=0.0, rtol=0.0)

    # Lane-divisible but not 1024-divisible size: exercises the widened fast path.
    x_odd = jax.random.normal(key, (3, 5, 128), dtype=jnp.float32)
    out_odd = submodule_forward(x_odd)
    jax.block_until_ready(out_odd)
    assert jnp.allclose(out_odd, jnp.maximum(x_odd, 0.0) * 2)

    # bf16 input: exercises dtype-aware sublane / byte-sized tiling.
    x_bf = jax.random.normal(key, (4, 8, 16, 16), dtype=jnp.bfloat16)
    out_bf = submodule_forward(x_bf)
    jax.block_until_ready(out_bf)
    assert out_bf.dtype == jnp.bfloat16
    assert jnp.allclose(out_bf.astype(jnp.float32),
                        jnp.maximum(x_bf.astype(jnp.float32), 0.0) * 2)

    # Tensor used in the source file: [-1, 0, 1] -> [0, 0, 2] (ragged path).
    x3 = jnp.array([-1.0, 0.0, 1.0], dtype=jnp.float32)
    out3 = submodule_forward(x3)
    jax.block_until_ready(out3)
    assert out3.shape == x3.shape
    assert jnp.allclose(out3, jnp.array([0.0, 0.0, 2.0]))

    print("KERNEL_OK")
</pallas_src>

<mosaic_0001>
module attributes {stable_mosaic.version = 11 : i64} {
  func.func @_relu_times2_kernel(%arg0: i32, %arg1: memref<16x128xf32, #tpu.memory_space<vmem>>, %arg2: memref<16x128xf32, #tpu.memory_space<vmem>>) attributes {dimension_semantics = [#tpu.dimension_semantics<parallel>], iteration_bounds = array<i64: 1>, scalar_prefetch = 0 : i64, scratch_operands = 0 : i64, tpu.core_type = #tpu.core_type<tc>, window_params = [{transform_indices = @transform_0, window_bounds = array<i64: 16, 128>}, {transform_indices = @transform_1, window_bounds = array<i64: 16, 128>}]} {
    %c0 = arith.constant 0 : index
    %c0_0 = arith.constant 0 : index
    %0 = vector.load %arg1[%c0, %c0_0] : memref<16x128xf32, #tpu.memory_space<vmem>>, vector<16x128xf32>
    %cst = arith.constant 0.000000e+00 : f32
    %1 = vector.broadcast %cst : f32 to vector<16x128xf32>
    %2 = arith.maximumf %0, %1 : vector<16x128xf32>
    %cst_1 = arith.constant 2.000000e+00 : f32
    %3 = vector.broadcast %cst_1 : f32 to vector<16x128xf32>
    %4 = arith.mulf %2, %3 : vector<16x128xf32>
    %c0_2 = arith.constant 0 : index
    %c0_3 = arith.constant 0 : index
    %5 = vector.load %arg2[%c0_2, %c0_3] : memref<16x128xf32, #tpu.memory_space<vmem>>, vector<16x128xf32>
    tpu.vector_store %arg2[%c0_2, %c0_3], %4 {strides = array<i32>} : memref<16x128xf32, #tpu.memory_space<vmem>>, vector<16x128xf32>,
    return
  }
  func.func @transform_0(%arg0: i32) -> (i32, i32) {
    %c0_i32 = arith.constant 0 : i32
    %c0_i32_0 = arith.constant 0 : i32
    return %arg0, %c0_i32 : i32, i32
  }
  func.func @transform_1(%arg0: i32) -> (i32, i32) {
    %c0_i32 = arith.constant 0 : i32
    %c0_i32_0 = arith.constant 0 : i32
    return %arg0, %c0_i32 : i32, i32
  }
}

</mosaic_0001>

<bundles_post_ra>
// kernel: tpu_custom_call.1
= control target key start
LH: loop header
LB: loop body
LE: loop exit
PB: predicated region body
PF: predicated region fallthrough
CT: control target
= control target key end

     0   :  { %6 = vsyncpa [#allocation3], 0  ;;  %s144_s0 = inlined_call_operand.hbm [shape: f32[16,128], index: 0, kind: input, shape index: {}]   ;;  %s145_s1 = inlined_call_operand.hbm [shape: f32[16,128], index: 1, kind: output, shape index: {}]  }
   0x1   :  { %7 = vsyncpa [#allocation4], 0  ;;  %s100_s6 = smov [#allocation2]   ;;  %s52_s10 = scalar_lea.hbm %s144_s0, 256 }
   0x2   :  { %s13_s7 = sshll.u32 %s100_s6, 4  ;;  %p53_p0 = scmp.ne.s32.totalorder %s144_s0, %s52_s10  ;;  %s14_s7 = int_to_ptr.vmem [resolvable:$true] %s13_s7 }
   0x3   :  { %p56_p1 = scmp.lt.u32.totalorder %s52_s10, %s144_s0 }
   0x5   :  { %p58_p2 = pnand %p56_p1, %p53_p0 }
   0x7   :  { %61 = shalt.err (!%p58_p2)
}
   0x8   :  { %s62_s15 = scalar_lea.vmem %s14_s7, 256  ;;  %p67_p4 = scmp.lt.s32.totalorder %s14_s7, %s14_s7 }
   0x9   :  { %p63_p3 = scmp.ne.s32.totalorder %s14_s7, %s62_s15  ;;  %p68_p5 = scmp.lt.s32.totalorder %s62_s15, %s62_s15 }
   0xb   :  { %p69_p6 = por %p68_p5, %p67_p4 }
   0xd   :  { %p70_p7 = pnand %p69_p6, %p63_p3 }
   0xf   :  { %73 = shalt.err (!%p70_p7)
}
  0x10   :  { %s101_s16 = smov 128   ;;  %s102_s17 = smov 8  }
  0x11   :  { %19 = dma.hbm_to_vmem [thread:$0]  %s144_s0, 256, %s14_s7, [#allocation3], %s101_s16, %s101_s16, %s102_s17  }
  0x12   :  { %96 = dma.done.wait [#allocation3], 256  }
  0x13   :  { %97 = vsyncadd [#allocation3], 4294967040  ;;  %v23_v0 = vld [vmem:[#allocation2] sm:$0xff]  ;;  %v24_v1 = vld [vmem:[#allocation2 + $0x8] sm:$0xff]  ;;  %s103_s20 = smov [#allocation5]  }
  0x14   :  { %s36_s21 = sshll.u32 %s103_s20, 4  ;;  %v25_v2 = vmax.f32 %v23_v0, 0.0  ;;  %v26_v3 = vmax.f32 %v24_v1, 0.0  ;;  %s37_s21 = int_to_ptr.vmem [resolvable:$true] %s36_s21 }
  0x15   :  { %s74_s22 = scalar_lea.vmem %s37_s21, 256  ;;  %p79_p9 = scmp.lt.s32.totalorder %s37_s21, %s37_s21 }
  0x16   :  { %v27_v4 = vmul.f32 2.0, %v25_v2  ;;  %v28_v5 = vmul.f32 2.0, %v26_v3  ;;  %p75_p8 = scmp.ne.s32.totalorder %s37_s21, %s74_s22  ;;  %p80_p10 = scmp.lt.s32.totalorder %s74_s22, %s74_s22 }
  0x18   :  { %29 = vst [vmem:[#allocation5] sm:$0xff] %v27_v4  ;;  %30 = vst [vmem:[#allocation5 + $0x8] sm:$0xff] %v28_v5  ;;  %p81_p11 = por %p80_p10, %p79_p9 }
  0x1a   :  { %p82_p12 = pnand %p81_p11, %p75_p8 }
  0x1c   :  { %85 = shalt.err (!%p82_p12)
}
  0x1d   :  { %s86_s24 = scalar_lea.hbm %s145_s1, 256 }
  0x1e   :  { %p87_p13 = scmp.ne.s32.totalorder %s145_s1, %s86_s24  ;;  %p90_p0 = scmp.lt.u32.totalorder %s86_s24, %s145_s1 }
  0x20   :  { %p92_p1 = pnand %p90_p0, %p87_p13 }
  0x22   :  { %95 = shalt.err (!%p92_p1)
}
  0x23   :  { %42 = dma.vmem_to_hbm [thread:$0]  %s37_s21, 256, %s145_s1, [#allocation4], %s101_s16, %s101_s16, %s102_s17  }
  0x24   :  { %98 = dma.done.wait [#allocation4], 256  }
  0x25   :  { %99 = vsyncadd [#allocation4], 4294967040 }
  0x26   :  { %46 = vsyncpa [#allocation3], 1 }
  0x27   :  { %47 = vsyncpa [#allocation4], 1 }

</bundles_post_ra>
